<compile_context>
chip_gen: v6e
topology: v6e:2x2x1
jax: 0.10.0
libtpu: 0.0.40
codegen_flags: <defaults>
</compile_context>

<pallas_src>
from functools import partial

import jax
import jax.numpy as jnp
from jax import lax
from jax.experimental import pallas as pl
from jax.experimental.pallas import tpu as pltpu


def _sgu_kernel(x_ref, gb_ref, w_ref, o_ref, vn_ref, *, d_ffn, seq_len):
    # x_ref : (S, 2D)   one batch element, lane-dense (2D = 512 lanes)
    # gb_ref: (2, D)    row 0 = gamma, row 1 = beta (LayerNorm affine)
    # w_ref : (S, S+1)  Conv1d(k=1) weight with bias folded as last column
    # o_ref : (S, D)    output tile for this batch element
    # vn_ref: (S+1, D)  f32 VMEM scratch: normalized v rows + trailing ones row
    S, D = seq_len, d_ffn

    # Static, 128-aligned lane slices (D = 256): no mid-tile cuts, no reshapes.
    u = x_ref[:, :D].astype(jnp.float32)                 # (S, D)
    v = x_ref[:, D:].astype(jnp.float32)                 # (S, D)

    # Two-pass LayerNorm over the last dim (torch semantics, eps = 1e-5).
    mean = jnp.mean(v, axis=-1, keepdims=True)           # (S, 1)  XLU reduce
    centered = v - mean
    var = jnp.mean(centered * centered, axis=-1, keepdims=True)
    rstd = lax.rsqrt(var + 1e-5)                         # EUP
    gamma = gb_ref[0:1, :].astype(jnp.float32)           # (1, D)
    beta = gb_ref[1:2, :].astype(jnp.float32)            # (1, D)
    vn = centered * rstd * gamma + beta                  # (S, D)

    # Stage normalized v + a ones row so the Conv1d bias rides the matmul.
    # (Set the ones row every step: scratch is per-core and the grid axis may
    #  be split across cores, so a program_id==0 guard would be unsafe.)
    vn_ref[0:S, :] = vn
    vn_ref[S:S + 1, :] = jnp.ones((1, D), jnp.float32)

    # Spatial projection: one MXU matmul (S, S+1) @ (S+1, D), f32 accumulate.
    vp = jnp.dot(w_ref[...].astype(jnp.float32), vn_ref[...],
                 preferred_element_type=jnp.float32)     # (S, D)

    o_ref[...] = (u * vp).astype(o_ref.dtype)            # lane-dense store


@jax.jit
def spatial_gating_unit(x, gamma, beta, w, b):
    """x: (B, S, 2*D); gamma/beta: (D,); w: (S, S); b: (S,) -> (B, S, D)."""
    B, S, twoD = x.shape
    D = twoD // 2

    # Wrapper-side packing only (tiny XLA ops, no HBM round-trip of x):
    gb = jnp.stack([gamma, beta], axis=0)                # (2, D)
    w_aug = jnp.concatenate([w, b[:, None]], axis=1)     # (S, S+1), bias folded

    kernel = partial(_sgu_kernel, d_ffn=D, seq_len=S)

    return pl.pallas_call(
        kernel,
        out_shape=jax.ShapeDtypeStruct((B, S, D), x.dtype),
        grid=(B,),
        in_specs=[
            pl.BlockSpec((None, S, twoD), lambda bi: (bi, 0, 0)),  # x: per-batch tile
            pl.BlockSpec((2, D), lambda bi: (0, 0)),               # gamma/beta (resident)
            pl.BlockSpec((S, S + 1), lambda bi: (0, 0)),           # w_aug (resident)
        ],
        out_specs=pl.BlockSpec((None, S, D), lambda bi: (bi, 0, 0)),
        scratch_shapes=[pltpu.VMEM((S + 1, D), jnp.float32)],
        compiler_params=pltpu.CompilerParams(
            dimension_semantics=("parallel",)),
        cost_estimate=pl.CostEstimate(
            flops=2 * B * S * (S + 1) * D,
            transcendentals=B * S,
            bytes_accessed=4 * (B * S * twoD + B * S * D + S * (S + 1) + 2 * D)),
    )(x, gb, w_aug)


def spatial_gating_unit_ref(x, gamma, beta, w, b):
    """Pure-JAX reference for correctness check (matches PyTorch semantics)."""
    D = x.shape[-1] // 2
    u, v = x[..., :D], x[..., D:]
    mean = jnp.mean(v, axis=-1, keepdims=True)
    var = jnp.mean((v - mean) ** 2, axis=-1, keepdims=True)
    v = (v - mean) / jnp.sqrt(var + 1e-5)
    v = v * gamma + beta
    v = jnp.einsum("ij,bjd->bid", w, v) + b[None, :, None]
    return u * v


if __name__ == "__main__":
    # Shapes from MRASleepNet's gMLPBlock(d_model=128, d_ffn=256, seq_len=63):
    # the SGU input is (B, seq_len, 2*d_ffn) = (B, 63, 512), D = d_ffn = 256.
    B, S, D = 2, 63, 256
    key = jax.random.PRNGKey(0)
    kx, kw, kg, kb = jax.random.split(key, 4)

    # Non-zero-mean input + non-trivial affine to exercise the full path.
    x = jax.random.normal(kx, (B, S, 2 * D), dtype=jnp.float32) + 0.5

    # LayerNorm(d_ffn) affine; Conv1d(seq_len, seq_len, 1) weight (S, S) and
    # bias (constant 1.0 per the module's nn.init.constant_).
    gamma = 1.0 + 0.1 * jax.random.normal(kg, (D,), dtype=jnp.float32)
    beta = 0.1 * jax.random.normal(kb, (D,), dtype=jnp.float32)
    w = jax.random.normal(kw, (S, S), dtype=jnp.float32) * 0.1
    b = jnp.full((S,), 1.0, dtype=jnp.float32)

    out = jax.block_until_ready(spatial_gating_unit(x, gamma, beta, w, b))
    ref = spatial_gating_unit_ref(x, gamma, beta, w, b)

    assert out.shape == (B, S, D), out.shape
    assert jnp.allclose(out, ref, atol=1e-4, rtol=1e-4), "mismatch vs reference"

    print("KERNEL_OK")
</pallas_src>

<mosaic_0001>
module attributes {stable_mosaic.version = 11 : i64} {
  func.func @_sgu_kernel(%arg0: i32, %arg1: memref<1x63x512xf32, #tpu.memory_space<vmem>>, %arg2: memref<2x256xf32, #tpu.memory_space<vmem>>, %arg3: memref<63x64xf32, #tpu.memory_space<vmem>>, %arg4: memref<1x63x256xf32, #tpu.memory_space<vmem>>, %arg5: memref<64x256xf32, #tpu.memory_space<vmem>>) attributes {dimension_semantics = [#tpu.dimension_semantics<parallel>], iteration_bounds = array<i64: 2>, scalar_prefetch = 0 : i64, scratch_operands = 1 : i64, tpu.core_type = #tpu.core_type<tc>, window_params = [{transform_indices = @transform_0, window_bounds = array<i64: 1, 63, 512>}, {pipeline_mode = #tpu.pipeline_mode<synchronous>, transform_indices = @transform_1, window_bounds = array<i64: 2, 256>}, {pipeline_mode = #tpu.pipeline_mode<synchronous>, transform_indices = @transform_2, window_bounds = array<i64: 63, 64>}, {transform_indices = @transform_3, window_bounds = array<i64: 1, 63, 256>}]} {
    %c0 = arith.constant 0 : index
    %c0_0 = arith.constant 0 : index
    %c0_1 = arith.constant 0 : index
    %0 = vector.load %arg1[%c0, %c0_0, %c0_1] : memref<1x63x512xf32, #tpu.memory_space<vmem>>, vector<1x63x256xf32>
    %1 = vector.shape_cast %0 : vector<1x63x256xf32> to vector<63x256xf32>
    %c0_2 = arith.constant 0 : index
    %c0_3 = arith.constant 0 : index
    %c256 = arith.constant 256 : index
    %2 = vector.load %arg1[%c0_2, %c0_3, %c256] : memref<1x63x512xf32, #tpu.memory_space<vmem>>, vector<1x63x256xf32>
    %3 = vector.shape_cast %2 : vector<1x63x256xf32> to vector<63x256xf32>
    %cst = arith.constant dense<0.000000e+00> : vector<63xf32>
    %4 = vector.multi_reduction <add>, %3, %cst [1] : vector<63x256xf32> to vector<63xf32>
    %5 = vector.shape_cast %4 : vector<63xf32> to vector<63x1xf32>
    %cst_4 = arith.constant 2.560000e+02 : f32
    %6 = vector.broadcast %cst_4 : f32 to vector<63x1xf32>
    %7 = arith.divf %5, %6 : vector<63x1xf32>
    %8 = vector.broadcast %7 : vector<63x1xf32> to vector<63x256xf32>
    %9 = arith.subf %3, %8 : vector<63x256xf32>
    %10 = arith.mulf %9, %9 : vector<63x256xf32>
    %cst_5 = arith.constant dense<0.000000e+00> : vector<63xf32>
    %11 = vector.multi_reduction <add>, %10, %cst_5 [1] : vector<63x256xf32> to vector<63xf32>
    %12 = vector.shape_cast %11 : vector<63xf32> to vector<63x1xf32>
    %cst_6 = arith.constant 2.560000e+02 : f32
    %13 = vector.broadcast %cst_6 : f32 to vector<63x1xf32>
    %14 = arith.divf %12, %13 : vector<63x1xf32>
    %cst_7 = arith.constant 9.99999974E-6 : f32
    %15 = vector.broadcast %cst_7 : f32 to vector<63x1xf32>
    %16 = arith.addf %14, %15 : vector<63x1xf32>
    %17 = math.rsqrt %16 : vector<63x1xf32>
    %c0_8 = arith.constant 0 : index
    %c0_9 = arith.constant 0 : index
    %18 = vector.load %arg2[%c0_8, %c0_9] : memref<2x256xf32, #tpu.memory_space<vmem>>, vector<1x256xf32>
    %c1 = arith.constant 1 : index
    %c0_10 = arith.constant 0 : index
    %19 = vector.load %arg2[%c1, %c0_10] : memref<2x256xf32, #tpu.memory_space<vmem>>, vector<1x256xf32>
    %20 = vector.broadcast %17 : vector<63x1xf32> to vector<63x256xf32>
    %21 = arith.mulf %9, %20 : vector<63x256xf32>
    %22 = vector.broadcast %18 : vector<1x256xf32> to vector<63x256xf32>
    %23 = arith.mulf %21, %22 : vector<63x256xf32>
    %24 = vector.broadcast %19 : vector<1x256xf32> to vector<63x256xf32>
    %25 = arith.addf %23, %24 : vector<63x256xf32>
    %c0_11 = arith.constant 0 : index
    %c0_12 = arith.constant 0 : index
    %26 = vector.load %arg5[%c0_11, %c0_12] : memref<64x256xf32, #tpu.memory_space<vmem>>, vector<63x256xf32>
    tpu.vector_store %arg5[%c0_11, %c0_12], %25 {strides = array<i32>} : memref<64x256xf32, #tpu.memory_space<vmem>>, vector<63x256xf32>,
    %cst_13 = arith.constant 1.000000e+00 : f32
    %27 = vector.broadcast %cst_13 : f32 to vector<1x256xf32>
    %c63 = arith.constant 63 : index
    %c0_14 = arith.constant 0 : index
    %28 = vector.load %arg5[%c63, %c0_14] : memref<64x256xf32, #tpu.memory_space<vmem>>, vector<1x256xf32>
    tpu.vector_store %arg5[%c63, %c0_14], %27 {strides = array<i32>} : memref<64x256xf32, #tpu.memory_space<vmem>>, vector<1x256xf32>,
    %c0_15 = arith.constant 0 : index
    %c0_16 = arith.constant 0 : index
    %29 = vector.load %arg3[%c0_15, %c0_16] : memref<63x64xf32, #tpu.memory_space<vmem>>, vector<63x64xf32>
    %c0_17 = arith.constant 0 : index
    %c0_18 = arith.constant 0 : index
    %30 = vector.load %arg5[%c0_17, %c0_18] : memref<64x256xf32, #tpu.memory_space<vmem>>, vector<64x256xf32>
    %cst_19 = arith.constant dense<0.000000e+00> : vector<63x256xf32>
    %31 = tpu.matmul %29, %30, %cst_19 {dimension_numbers = #tpu.dot_dimension_numbers<[1], [0], [0], [1], [0, 0, 1, 1], [], []>} : vector<63x64xf32>, vector<64x256xf32>, vector<63x256xf32> -> vector<63x256xf32>
    %32 = arith.mulf %1, %31 : vector<63x256xf32>
    %c0_20 = arith.constant 0 : index
    %c0_21 = arith.constant 0 : index
    %c0_22 = arith.constant 0 : index
    %33 = vector.load %arg4[%c0_20, %c0_21, %c0_22] : memref<1x63x256xf32, #tpu.memory_space<vmem>>, vector<1x63x256xf32>
    %34 = vector.shape_cast %33 : vector<1x63x256xf32> to vector<63x256xf32>
    %35 = vector.shape_cast %32 : vector<63x256xf32> to vector<1x63x256xf32>
    tpu.vector_store %arg4[%c0_20, %c0_21, %c0_22], %35 {strides = array<i32>} : memref<1x63x256xf32, #tpu.memory_space<vmem>>, vector<1x63x256xf32>,
    return
  }
  func.func @transform_0(%arg0: i32) -> (i32, i32, i32) {
    %c0_i32 = arith.constant 0 : i32
    %c0_i32_0 = arith.constant 0 : i32
    %c0_i32_1 = arith.constant 0 : i32
    return %arg0, %c0_i32, %c0_i32_0 : i32, i32, i32
  }
  func.func @transform_1(%arg0: i32) -> (i32, i32) {
    %c0_i32 = arith.constant 0 : i32
    %c0_i32_0 = arith.constant 0 : i32
    %c0_i32_1 = arith.constant 0 : i32
    return %c0_i32, %c0_i32_0 : i32, i32
  }
  func.func @transform_2(%arg0: i32) -> (i32, i32) {
    %c0_i32 = arith.constant 0 : i32
    %c0_i32_0 = arith.constant 0 : i32
    %c0_i32_1 = arith.constant 0 : i32
    return %c0_i32, %c0_i32_0 : i32, i32
  }
  func.func @transform_3(%arg0: i32) -> (i32, i32, i32) {
    %c0_i32 = arith.constant 0 : i32
    %c0_i32_0 = arith.constant 0 : i32
    %c0_i32_1 = arith.constant 0 : i32
    return %arg0, %c0_i32, %c0_i32_0 : i32, i32, i32
  }
}

</mosaic_0001>

<bundles_post_ra>
// kernel: spatial_gating_unit.1
= control target key start
LH: loop header
LB: loop body
LE: loop exit
PB: predicated region body
PF: predicated region fallthrough
CT: control target
= control target key end

     0   :  { %s760_s12 = smov 0   ;;  %s1003_s0 = inlined_call_operand.vmem [shape: f32[2,63,512], index: 0, kind: input, shape index: {}]   ;;  %s1004_s1 = inlined_call_operand.vmem [shape: f32[2,256], index: 1, kind: input, shape index: {}]   ;;  %s1005_s2 = inlined_call_operand.vmem [shape: f32[63,64], index: 2, kind: input, shape index: {}]   ;;  %s1006_s3 = inlined_call_operand.vmem [shape: f32[2,63,256], index: 3, kind: output, shape index: {}]  }
   0x1 LB: > { %s666_s13 = sadd.s32 4294967295, %s736_s12   ;;  %p670_p0 = scmp.ge.s32.totalorder %s736_s12, 1  ;;  %s736_s12 = sphi %s760_s12, %s13_s12  }
   0x2   : > { %p137_p1 = scmp.lt.s32.totalorder %s736_s12, 3 }
   0x4   : > { %p138_p2 = pnand %p670_p0, %p137_p1 }
   0x5   : > { %p161_p3 = scmp.lt.s32.totalorder (!%p138_p2), %s666_s13, 1 }
   0x6   : > { %141 = sbr.rel (%p138_p2) target bundleno = 562 (0x232), region = 32 }
   0xb   : > { %s1008_s13 = smov (!%p161_p3, %s666_s13), 1  ;;  %vm224_vm0 = vcmask 1046528   ;;  %vm441_vm2 = vcmask 523264  }
   0xc   : > { %s686_s14 = sshll.u32 %s1008_s13, 8  ;;  %s687_s11 = sshll.u32 %s1008_s13, 7 }
   0xd   : > { %s774_s17 = scalar_lea.vmem %s1003_s0, %s686_s14  ;;  %s968_s16 = scalar_lea.vmem %s1006_s3, %s687_s11 }
   0xe   : > { %v201_v0 = vld [vmem:[%s774_s17 + $0xf0] sm:$0x7f]  ;;  %v202_v1 = vld [vmem:[%s774_s17 + $0xf8] sm:$0x7f] }
   0xf   : > { %v199_v2 = vld [vmem:[%s774_s17 + $0xd0] sm:$0xff]  ;;  %v225_v3 = vsel %vm224_vm0, %v201_v0, 0.0  ;;  %v226_v4 = vsel %vm224_vm0, %v202_v1, 0.0  ;;  %v200_v5 = vld [vmem:[%s774_s17 + $0xd8] sm:$0xff] }
  0x10   : > { %v197_v6 = vld [vmem:[%s774_s17 + $0xb0] sm:$0xff]  ;;  %v198_v7 = vld [vmem:[%s774_s17 + $0xb8] sm:$0xff]  ;;  %v227_v8 = vadd.f32 %v226_v4, %v225_v3  ;;  %v221_v12 = vadd.f32 %v200_v5, %v199_v2 }
  0x11   : > { %v218_v9 = vadd.f32 %v198_v7, %v197_v6  ;;  %v195_v10 = vld [vmem:[%s774_s17 + $0x90] sm:$0xff]  ;;  %v196_v11 = vld [vmem:[%s774_s17 + $0x98] sm:$0xff] }
  0x12   : > { %228 = vadd.xlane.f32.xlu0 %v227_v8  ;;  %v215_v13 = vadd.f32 %v196_v11, %v195_v10  ;;  %v193_v14 = vld [vmem:[%s774_s17 + $0x70] sm:$0xff]  ;;  %v194_v15 = vld [vmem:[%s774_s17 + $0x78] sm:$0xff] }
  0x13   : > { %219 = vadd.xlane.f32.xlu1 %v218_v9  ;;  %v191_v16 = vld [vmem:[%s774_s17 + $0x50] sm:$0xff]  ;;  %v192_v17 = vld [vmem:[%s774_s17 + $0x58] sm:$0xff]  ;;  %v212_v18 = vadd.f32 %v194_v15, %v193_v14 }
  0x14   : > { %v209_v19 = vadd.f32 %v192_v17, %v191_v16  ;;  %v189_v20 = vld [vmem:[%s774_s17 + $0x30] sm:$0xff]  ;;  %v190_v21 = vld [vmem:[%s774_s17 + $0x38] sm:$0xff] }
  0x15   : > { %v187_v22 = vld [vmem:[%s774_s17 + $0x10] sm:$0xff]  ;;  %v188_v23 = vld [vmem:[%s774_s17 + $0x18] sm:$0xff]  ;;  %v206_v24 = vadd.f32 %v190_v21, %v189_v20 }
  0x16   : > { %222 = vadd.xlane.f32.xlu0 %v221_v12  ;;  %v203_v25 = vadd.f32 %v188_v23, %v187_v22 }
  0x17   : > { %216 = vadd.xlane.f32.xlu1 %v215_v13 }
  0x1a   : > { %213 = vadd.xlane.f32.xlu0 %v212_v18 }
  0x1b   : > { %210 = vadd.xlane.f32.xlu1 %v209_v19 }
  0x1e   : > { %207 = vadd.xlane.f32.xlu0 %v206_v24 }
  0x1f   : > { %204 = vadd.xlane.f32.xlu1 %v203_v25 }
  0x9b   : > { %v229_v26 = vpop.xlane.xlu0 %228 }
  0x9c   : > { %v220_v27 = vpop.xlane.xlu1 %219  ;;  %v238_v28 = vmul.f32 0.00390625, %v229_v26 }
  0x9d   : > { %v236_v29 = vmul.f32 0.00390625, %v220_v27 }
  0x9e   : > { %v794_v30 = vsub.f32 %v201_v0, %v238_v28  ;;  %v796_v31 = vsub.f32 %v202_v1, %v238_v28 }
  0x9f   : > { %v798_v32 = vsub.f32 %v197_v6, %v236_v29  ;;  %v800_v33 = vsub.f32 %v198_v7, %v236_v29  ;;  %v223_v34 = vpop.xlane.xlu0 %222 }
  0xa0   : > { %v217_v35 = vpop.xlane.xlu1 %216  ;;  %v237_v36 = vmul.f32 0.00390625, %v223_v34  ;;  %v269_v38 = vmul.f32 %v794_v30, %v794_v30  ;;  %v270_v39 = vmul.f32 %v796_v31, %v796_v31 }
  0xa1   : > { %v235_v37 = vmul.f32 0.00390625, %v217_v35  ;;  %v265_v40 = vmul.f32 %v798_v32, %v798_v32  ;;  %v266_v41 = vmul.f32 %v800_v33, %v800_v33 }
  0xa2   : > { %v810_v42 = vsub.f32 %v199_v2, %v237_v36  ;;  %v812_v43 = vsub.f32 %v200_v5, %v237_v36  ;;  %v292_v47 = vsel %vm224_vm0, %v269_v38, 0.0  ;;  %v293_v48 = vsel %vm224_vm0, %v270_v39, 0.0 }
  0xa3   : > { %v814_v44 = vsub.f32 %v195_v10, %v235_v37  ;;  %v816_v45 = vsub.f32 %v196_v11, %v235_v37  ;;  %v214_v46 = vpop.xlane.xlu0 %213  ;;  %v294_v51 = vadd.f32 %v293_v48, %v292_v47  ;;  %v286_v55 = vadd.f32 %v266_v41, %v265_v40 }
  0xa4   : > { %v211_v49 = vpop.xlane.xlu1 %210  ;;  %v234_v50 = vmul.f32 0.00390625, %v214_v46  ;;  %v267_v53 = vmul.f32 %v810_v42, %v810_v42  ;;  %v268_v54 = vmul.f32 %v812_v43, %v812_v43 }
  0xa5   : > { %v233_v52 = vmul.f32 0.00390625, %v211_v49  ;;  %v263_v56 = vmul.f32 %v814_v44, %v814_v44  ;;  %v264_v57 = vmul.f32 %v816_v45, %v816_v45  ;;  %295 = vadd.xlane.f32.xlu0 %v294_v51 }
  0xa6   : > { %v828_v58 = vsub.f32 %v193_v14, %v234_v50  ;;  %v830_v59 = vsub.f32 %v194_v15, %v234_v50  ;;  %v289_v63 = vadd.f32 %v268_v54, %v267_v53  ;;  %v321_v53 = vld [vmem:[%s1004_s1] ss:$2 sm:$0x3] }
  0xa7   : > { %v832_v60 = vsub.f32 %v191_v16, %v233_v52  ;;  %v834_v61 = vsub.f32 %v192_v17, %v233_v52  ;;  %v208_v62 = vpop.xlane.xlu0 %207  ;;  %v283_v5 = vadd.f32 %v264_v57, %v263_v56  ;;  %v675_v57 = vld [vmem:[%s1004_s1 + $0x1] ss:$2 sm:$0x3] }
  0xa8   : > { %v205_v0 = vpop.xlane.xlu1 %204  ;;  %v232_v1 = vmul.f32 0.00390625, %v208_v62  ;;  %v261_v3 = vmul.f32 %v828_v58, %v828_v58  ;;  %v262_v4 = vmul.f32 %v830_v59, %v830_v59  ;;  %290 = vadd.xlane.f32.xlu1 %v289_v63 }
  0xa9   : > { %v231_v2 = vmul.f32 0.00390625, %v205_v0  ;;  %v259_v6 = vmul.f32 %v832_v60, %v832_v60  ;;  %v260_v7 = vmul.f32 %v834_v61, %v834_v61  ;;  %287 = vadd.xlane.f32.xlu0 %v286_v55 }
  0xaa   : > { %v844_v8 = vsub.f32 %v189_v20, %v232_v1  ;;  %v846_v9 = vsub.f32 %v190_v21, %v232_v1  ;;  %v280_v12 = vadd.f32 %v262_v4, %v261_v3  ;;  %v341_v20 = vlaneseq }
  0xab   : > { %v848_v10 = vsub.f32 %v187_v22, %v231_v2  ;;  %v850_v11 = vsub.f32 %v188_v23, %v231_v2  ;;  %v277_v15 = vadd.f32 %v260_v7, %v259_v6  ;;  %v738_v21 = vmov 1.0  }
  0xac   : > { %v257_v13 = vmul.f32 %v844_v8, %v844_v8  ;;  %v258_v14 = vmul.f32 %v846_v9, %v846_v9  ;;  %284 = vadd.xlane.f32.xlu1 %v283_v5  ;;  %vm412_vm1 = vcmp.lt.s32.totalorder %v341_v20, 256  ;;  %v739_v22 = vmov 0.0  }
  0xad   : > { %v255_v16 = vmul.f32 %v848_v10, %v848_v10  ;;  %v256_v17 = vmul.f32 %v850_v11, %v850_v11  ;;  %281 = vadd.xlane.f32.xlu0 %v280_v12  ;;  %415 = vst.msk [vmem:[#allocation2 + $0x77] ss:$8 sm:$0x3] %vm412_vm1, %v738_v21  ;;  %530 = vmatprep.mubr.f32.mxu0 %v739_v22  ;;  %v342_v39 = vshrl.u32 %v341_v20, 7 }
  0xae   : > { %v274_v18 = vadd.f32 %v258_v14, %v257_v13  ;;  %554 = vmatprep.mubr.f32.mxu1 %v739_v22 }
  0xaf   : > { %v271_v19 = vadd.f32 %v256_v17, %v255_v16  ;;  %v343_v50 = vsub.s32 0, %v342_v39  ;;  %v347_v51 = vsub.s32 1, %v342_v39 }
  0xb0   : > { %278 = vadd.xlane.f32.xlu1 %v277_v15 }
  0xb1   : > { %275 = vadd.xlane.f32.xlu0 %v274_v18  ;;  %v868_v63 = vrot.slane %v321_v53, %v343_v50  ;;  %v870_v0 = vrot.slane %v321_v53, %v347_v51  ;;  %v872_v3 = vrot.slane %v675_v57, %v343_v50  ;;  %v874_v4 = vrot.slane %v675_v57, %v347_v51 }
  0xb4   : > { %272 = vadd.xlane.f32.xlu1 %v271_v19 }
 0x12e   : > { %v296_v23 = vpop.xlane.xlu0 %295 }
 0x12f   : > { %v304_v24 = vmul.f32 0.00390625, %v296_v23 }
 0x131   : > { %v312_v25 = vadd.f32 1e-05, %v304_v24  ;;  %v291_v26 = vpop.xlane.xlu1 %290 }
 0x132   : > { %v303_v27 = vmul.f32 0.00390625, %v291_v26  ;;  %v288_v28 = vpop.xlane.xlu0 %287 }
 0x133   : > { %714 = vrsqrt.f32 %v312_v25  ;;  %v302_v29 = vmul.f32 0.00390625, %v288_v28 }
 0x134   : > { %v311_v34 = vadd.f32 1e-05, %v303_v27 }
 0x135   : > { %v310_v35 = vadd.f32 1e-05, %v302_v29  ;;  %v285_v36 = vpop.xlane.xlu1 %284 }
 0x136   : > { %716 = vrsqrt.f32 %v311_v34  ;;  %v301_v37 = vmul.f32 0.00390625, %v285_v36  ;;  %v282_v38 = vpop.xlane.xlu0 %281 }
 0x137   : > { %718 = vrsqrt.f32 %v310_v35  ;;  %v300_v40 = vmul.f32 0.00390625, %v282_v38 }
 0x138   : > { %v309_v41 = vadd.f32 1e-05, %v301_v37 }
 0x139   : > { %v308_v46 = vadd.f32 1e-05, %v300_v40  ;;  %v279_v47 = vpop.xlane.xlu1 %278 }
 0x13a   : > { %720 = vrsqrt.f32 %v309_v41  ;;  %v299_v48 = vmul.f32 0.00390625, %v279_v47  ;;  %v276_v49 = vpop.xlane.xlu0 %275 }
 0x13b   : > { %722 = vrsqrt.f32 %v308_v46  ;;  %v298_v52 = vmul.f32 0.00390625, %v276_v49 }
 0x13c   : > { %v307_v54 = vadd.f32 1e-05, %v299_v48 }
 0x13d   : > { %v306_v55 = vadd.f32 1e-05, %v298_v52  ;;  %v273_v56 = vpop.xlane.xlu1 %272 }
 0x13e   : > { %724 = vrsqrt.f32 %v307_v54  ;;  %v297_v62 = vmul.f32 0.00390625, %v273_v56 }
 0x13f   : > { %726 = vrsqrt.f32 %v306_v55 }
 0x140   : > { %v715_v1 = vpop.eup %714  ;;  %v305_v2 = vadd.f32 1e-05, %v297_v62 }
 0x141   : > { %v338_v5 = vmul.f32 %v715_v1, %v794_v30  ;;  %v339_v6 = vmul.f32 %v715_v1, %v796_v31 }
 0x142   : > { %728 = vrsqrt.f32 %v305_v2  ;;  %v422_v2 = vld [vmem:[%s1005_s2 + $0x28] sm:$0xff] }
 0x143   : > { %v717_v7 = vpop.eup %716  ;;  %v365_v12 = vmul.f32 %v868_v63, %v338_v5  ;;  %v366_v13 = vmul.f32 %v870_v0, %v339_v6  ;;  %v420_v5 = vld [vmem:[%s1005_s2 + $0x18] sm:$0xff] }
 0x144   : > { %v719_v14 = vpop.eup %718  ;;  %v336_v15 = vmul.f32 %v717_v7, %v810_v42  ;;  %v337_v16 = vmul.f32 %v717_v7, %v812_v43  ;;  %v424_v6 = vld [vmem:[%s1005_s2 + $0x38] sm:$0x7f]  ;;  %v171_v7 = vld [vmem:[%s774_s17] sm:$0xff] }
 0x145   : > { %v392_v17 = vadd.f32 %v872_v3, %v365_v12  ;;  %v393_v18 = vadd.f32 %v874_v4, %v366_v13  ;;  %v334_v19 = vmul.f32 %v719_v14, %v798_v32  ;;  %v335_v30 = vmul.f32 %v719_v14, %v800_v33  ;;  %v179_v12 = vld [vmem:[%s774_s17 + $0x80] sm:$0xff]  ;;  %v172_v13 = vld [vmem:[%s774_s17 + $0x8] sm:$0xff] }
 0x146   : > { %v363_v31 = vmul.f32 %v868_v63, %v336_v15  ;;  %v364_v20 = vmul.f32 %v870_v0, %v337_v16  ;;  %v180_v16 = vld [vmem:[%s774_s17 + $0x88] sm:$0xff] }
 0x147   : > { %v721_v21 = vpop.eup %720  ;;  %408 = vst [vmem:[#allocation2 + $0x70] sm:$0x7f] %v392_v17  ;;  %409 = vst [vmem:[#allocation2 + $0x78] sm:$0x7f] %v393_v18  ;;  %v361_v23 = vmul.f32 %v868_v63, %v334_v19  ;;  %v362_v42 = vmul.f32 %v870_v0, %v335_v30  ;;  %v173_v19 = vld [vmem:[%s774_s17 + $0x20] sm:$0xff] }
 0x148   : > { %v723_v43 = vpop.eup %722  ;;  %v390_v24 = vadd.f32 %v872_v3, %v363_v31  ;;  %v391_v25 = vadd.f32 %v874_v4, %v364_v20  ;;  %v332_v32 = vmul.f32 %v721_v21, %v814_v44  ;;  %v333_v33 = vmul.f32 %v721_v21, %v816_v45  ;;  %v181_v20 = vld [vmem:[%s774_s17 + $0xa0] sm:$0xff] }
 0x149   : > { %v388_v26 = vadd.f32 %v872_v3, %v361_v23  ;;  %v389_v27 = vadd.f32 %v874_v4, %v362_v42  ;;  %v330_v28 = vmul.f32 %v723_v43, %v828_v58  ;;  %v331_v29 = vmul.f32 %v723_v43, %v830_v59  ;;  %v174_v42 = vld [vmem:[%s774_s17 + $0x28] sm:$0xff] }
 0x14a   : > { %v359_v34 = vmul.f32 %v868_v63, %v332_v32  ;;  %v360_v35 = vmul.f32 %v870_v0, %v333_v33 }
 0x14b   : > { %v725_v36 = vpop.eup %724  ;;  %v357_v37 = vmul.f32 %v868_v63, %v330_v28  ;;  %v358_v38 = vmul.f32 %v870_v0, %v331_v29  ;;  %v183_v29 = vld [vmem:[%s774_s17 + $0xc0] sm:$0xff] }
 0x14c   : > { %v727_v44 = vpop.eup %726  ;;  %v386_v45 = vadd.f32 %v872_v3, %v359_v34  ;;  %v387_v39 = vadd.f32 %v874_v4, %v360_v35  ;;  %v328_v40 = vmul.f32 %v725_v36, %v832_v60  ;;  %v329_v58 = vmul.f32 %v725_v36, %v834_v61  ;;  %v176_v36 = vld [vmem:[%s774_s17 + $0x48] sm:$0xff] }
 0x14d   : > { %v384_v59 = vadd.f32 %v872_v3, %v357_v37  ;;  %v385_v41 = vadd.f32 %v874_v4, %v358_v38  ;;  %v326_v46 = vmul.f32 %v727_v44, %v844_v8  ;;  %v327_v47 = vmul.f32 %v727_v44, %v846_v9  ;;  %v184_v44 = vld [vmem:[%s774_s17 + $0xc8] sm:$0xff] }
 0x14e   : > { %v355_v48 = vmul.f32 %v868_v63, %v328_v40  ;;  %v356_v49 = vmul.f32 %v870_v0, %v329_v58  ;;  %v440_v50 = vld [vmem:[#allocation2 + $0x78] sm:$0xff]  ;;  %v439_v51 = vld [vmem:[#allocation2 + $0x70] sm:$0xff]  ;;  %v177_v40 = vld [vmem:[%s774_s17 + $0x60] sm:$0xff] }
 0x14f   : > { %v729_v52 = vpop.eup %728  ;;  %v353_v53 = vmul.f32 %v868_v63, %v326_v46  ;;  %v354_v60 = vmul.f32 %v870_v0, %v327_v47  ;;  %482 = vmatprep.subr.mxu0 %v440_v50  ;;  %688 = vmatprep.subr.mxu1 %v440_v50 }
 0x150   : > { %v382_v61 = vadd.f32 %v872_v3, %v355_v48  ;;  %v383_v54 = vadd.f32 %v874_v4, %v356_v49  ;;  %v324_v8 = vmul.f32 %v729_v52, %v848_v10  ;;  %v325_v9 = vmul.f32 %v729_v52, %v850_v11  ;;  %483 = vmatpush1.msra.mxu0 %v439_v51  ;;  %v417_v11 = vld [vmem:[%s1005_s2] sm:$0xff]  ;;  %v178_v48 = vld [vmem:[%s774_s17 + $0x68] sm:$0xff] }
 0x151   : > { %v380_v55 = vadd.f32 %v872_v3, %v353_v53  ;;  %v381_v56 = vadd.f32 %v874_v4, %v354_v60  ;;  %696 = vmatpush1.msra.mxu1 %v439_v51  ;;  %484 = vmatprep.subr.mxu0 %v391_v25  ;;  %v186_v51 = vld [vmem:[%s774_s17 + $0xe8] sm:$0x7f] }
 0x152   : > { %v351_v57 = vmul.f32 %v868_v63, %v324_v8  ;;  %v352_v62 = vmul.f32 %v870_v0, %v325_v9  ;;  %689 = vmatprep.subr.mxu1 %v391_v25  ;;  %485 = vmatpush1.msra.mxu0 %v390_v24  ;;  %v421_v63 = vld [vmem:[%s1005_s2 + $0x20] sm:$0xff]  ;;  %v418_v0 = vld [vmem:[%s1005_s2 + $0x8] sm:$0xff] }
 0x153   : > { %697 = vmatpush1.msra.mxu1 %v390_v24  ;;  %486 = vmatprep.subr.mxu0 %v389_v27  ;;  %v182_v25 = vld [vmem:[%s774_s17 + $0xa8] sm:$0xff] }
 0x154   : > { %v378_v1 = vadd.f32 %v872_v3, %v351_v57  ;;  %v379_v10 = vadd.f32 %v874_v4, %v352_v62  ;;  %690 = vmatprep.subr.mxu1 %v389_v27  ;;  %487 = vmatpush1.msra.mxu0 %v388_v26  ;;  %v419_v3 = vld [vmem:[%s1005_s2 + $0x10] sm:$0xff] }
 0x155   : > { %698 = vmatpush1.msra.mxu1 %v388_v26  ;;  %488 = vmatprep.subr.mxu0 %v387_v39  ;;  %v423_v4 = vld [vmem:[%s1005_s2 + $0x30] sm:$0xff]  ;;  %v175_v26 = vld [vmem:[%s774_s17 + $0x40] sm:$0xff] }
 0x156   : > { %691 = vmatprep.subr.mxu1 %v387_v39  ;;  %489 = vmatpush1.msra.mxu0 %v386_v45 }
 0x157   : > { %699 = vmatpush1.msra.mxu1 %v386_v45  ;;  %490 = vmatprep.subr.mxu0 %v385_v41 }
 0x158   : > { %692 = vmatprep.subr.mxu1 %v385_v41  ;;  %491 = vmatpush1.msra.mxu0 %v384_v59  ;;  %v185_v41 = vld [vmem:[%s774_s17 + $0xe0] sm:$0x7f] }
 0x159   : > { %700 = vmatpush1.msra.mxu1 %v384_v59  ;;  %492 = vmatprep.subr.mxu0 %v383_v54 }
 0x15a   : > { %693 = vmatprep.subr.mxu1 %v383_v54  ;;  %493 = vmatpush1.msra.mxu0 %v382_v61 }
 0x15b   : > { %701 = vmatpush1.msra.mxu1 %v382_v61  ;;  %494 = vmatprep.subr.mxu0 %v381_v56 }
 0x15c   : > { %694 = vmatprep.subr.mxu1 %v381_v56  ;;  %495 = vmatpush1.msra.mxu0 %v380_v55 }
 0x15d   : > { %702 = vmatpush1.msra.mxu1 %v380_v55  ;;  %496 = vmatprep.subr.mxu0 %v379_v10 }
 0x15e   : > { %695 = vmatprep.subr.mxu1 %v379_v10  ;;  %497 = vmatpush1.msra.mxu0 %v378_v1 }
 0x15f   : > { %703 = vmatpush1.msra.mxu1 %v378_v1  ;;  %676 = vmatmul.mubr.msk.f32.vlgmr.msra.gmra.mxu0 %vm441_vm2, %v417_v11 }
 0x160   : > { %680 = vmatmul.mubr.msk.f32.vlgmr.msra.gmra.mxu1 %vm441_vm2, %v421_v63  ;;  %536 = vmatprep.mubr.f32.mxu0 %v739_v22 }
 0x161   : > { %560 = vmatprep.mubr.f32.mxu1 %v739_v22 }
 0x163   : > { %677 = vmatmul.mubr.msk.f32.gmra.mxu0 %vm441_vm2, %v418_v0 }
 0x164   : > { %681 = vmatmul.mubr.msk.f32.gmra.mxu1 %vm441_vm2, %v422_v2  ;;  %542 = vmatprep.mubr.f32.mxu0 %v739_v22 }
 0x165   : > { %566 = vmatprep.mubr.f32.mxu1 %v739_v22 }
 0x167   : > { %678 = vmatmul.mubr.msk.f32.gmra.mxu0 %vm441_vm2, %v419_v3 }
 0x168   : > { %682 = vmatmul.mubr.msk.f32.gmra.mxu1 %vm441_vm2, %v423_v4  ;;  %548 = vmatprep.mubr.f32.mxu0 %v739_v22 }
 0x169   : > { %572 = vmatprep.mubr.f32.mxu1 %v739_v22 }
 0x16b   : > { %679 = vmatmul.mubr.msk.f32.gmra.mxu0 %vm441_vm2, %v420_v5 }
 0x16c   : > { %683 = vmatmul.mubr.msk.f32.gmra.mxu1 %vm441_vm2, %v424_v6 }
 0x21f   : > { %v532_v22 = vpop.f32.mrf.mxu0 }
 0x220   : > { %v579_v14 = vmul.f32 %v532_v22, %v171_v7  ;;  %v556_v15 = vpop.f32.mrf.mxu1 }
 0x221   : > { %v587_v17 = vmul.f32 %v556_v15, %v179_v12  ;;  %v534_v18 = vpop.f32.mrf.mxu0 }
 0x222   : > { %595 = vst [vmem:[%s968_s16] sm:$0xff] %v579_v14  ;;  %v580_v30 = vmul.f32 %v534_v18, %v172_v13  ;;  %v558_v31 = vpop.f32.mrf.mxu1 }
 0x223   : > { %603 = vst [vmem:[%s968_s16 + $0x40] sm:$0xff] %v587_v17  ;;  %v588_v21 = vmul.f32 %v558_v31, %v180_v16  ;;  %v538_v23 = vpop.f32.mrf.mxu0 }
 0x224   : > { %596 = vst [vmem:[%s968_s16 + $0x8] sm:$0xff] %v580_v30  ;;  %v581_v43 = vmul.f32 %v538_v23, %v173_v19  ;;  %v562_v24 = vpop.f32.mrf.mxu1 }
 0x225   : > { %604 = vst [vmem:[%s968_s16 + $0x48] sm:$0xff] %v588_v21  ;;  %v589_v32 = vmul.f32 %v562_v24, %v181_v20  ;;  %v540_v33 = vpop.f32.mrf.mxu0 }
 0x226   : > { %597 = vst [vmem:[%s968_s16 + $0x10] sm:$0xff] %v581_v43  ;;  %v582_v27 = vmul.f32 %v540_v33, %v174_v42  ;;  %v564_v28 = vpop.f32.mrf.mxu1 }
 0x227   : > { %605 = vst [vmem:[%s968_s16 + $0x50] sm:$0xff] %v589_v32  ;;  %v590_v34 = vmul.f32 %v564_v28, %v182_v25  ;;  %v544_v35 = vpop.f32.mrf.mxu0 }
 0x228   : > { %598 = vst [vmem:[%s968_s16 + $0x18] sm:$0xff] %v582_v27  ;;  %v583_v37 = vmul.f32 %v544_v35, %v175_v26  ;;  %v568_v38 = vpop.f32.mrf.mxu1 }
 0x229   : > { %606 = vst [vmem:[%s968_s16 + $0x58] sm:$0xff] %v590_v34  ;;  %v591_v45 = vmul.f32 %v568_v38, %v183_v29  ;;  %v546_v39 = vpop.f32.mrf.mxu0 }
 0x22a   : > { %599 = vst [vmem:[%s968_s16 + $0x20] sm:$0xff] %v583_v37  ;;  %v584_v58 = vmul.f32 %v546_v39, %v176_v36  ;;  %v570_v59 = vpop.f32.mrf.mxu1 }
 0x22b   : > { %607 = vst [vmem:[%s968_s16 + $0x60] sm:$0xff] %v591_v45  ;;  %v592_v46 = vmul.f32 %v570_v59, %v184_v44  ;;  %v550_v47 = vpop.f32.mrf.mxu0 }
 0x22c   : > { %600 = vst [vmem:[%s968_s16 + $0x28] sm:$0xff] %v584_v58  ;;  %v585_v49 = vmul.f32 %v550_v47, %v177_v40  ;;  %v574_v50 = vpop.f32.mrf.mxu1 }
 0x22d   : > { %608 = vst [vmem:[%s968_s16 + $0x68] sm:$0xff] %v592_v46  ;;  %v593_v52 = vmul.f32 %v574_v50, %v185_v41  ;;  %v552_v53 = vpop.f32.mrf.mxu0 }
 0x22e   : > { %601 = vst [vmem:[%s968_s16 + $0x30] sm:$0xff] %v585_v49  ;;  %v586_v60 = vmul.f32 %v552_v53, %v178_v48  ;;  %v576_v61 = vpop.f32.mrf.mxu1 }
 0x22f   : > { %609 = vst [vmem:[%s968_s16 + $0x70] sm:$0x7f] %v593_v52  ;;  %v594_v54 = vmul.f32 %v576_v61, %v186_v51 }
 0x230   : > { %602 = vst [vmem:[%s968_s16 + $0x38] sm:$0xff] %v586_v60 }
 0x231   : > { %610 = vst [vmem:[%s968_s16 + $0x78] sm:$0x7f] %v594_v54 }
 0x232 PF: > { %s13_s12 = sadd.s32 1, %s736_s12  }
 0x233   : > { %p10_p4 = scmp.ge.s32.totalorder %s13_s12, 4  }
 0x235   :  { %12 = sbr.rel (!%p10_p4) target bundleno = 1 (0x1), region = 64 }

</bundles_post_ra>
